<compile_context>
chip_gen: v7x
topology: tpu7x:2x2x1
jax: 0.10.0
libtpu: 0.0.40
codegen_flags: <defaults>
</compile_context>

<pallas_src>
import jax
import jax.numpy as jnp
from jax import lax
from jax.experimental import pallas as pl
from jax.experimental.pallas import tpu as pltpu


def _logreg_kernel(x_ref, w_ref, b_ref, o_ref):
    # x_ref: (tp, Fp) VMEM   w_ref: (k, Fp) VMEM   b_ref: (1,) SMEM   o_ref: (k, tp) VMEM
    # bf16 operands keep the narrow (N = k) GEMV comfortably ahead of the HBM
    # delivery rate (f32 x f32 is multi-pass on the MXU); accumulate in f32.
    x = x_ref[...].astype(jnp.bfloat16)
    w = w_ref[...].astype(jnp.bfloat16)
    # z[r, g] = sum_c x[r, c] * w[g, c]  -- lane-major weight ("trans_b" GEMV).
    z = lax.dot_general(x, w, (((1,), (1,)), ((), ())),
                        preferred_element_type=jnp.float32)      # (tp, k)
    z = z + b_ref[0]                                             # scalar bias from SMEM
    p = 1.0 / (1.0 + jnp.exp(-z))                                # exact sigmoid
    # Lane-dense store: batch rows go on the 128-lane axis (tp is a multiple of
    # 128 whenever the batch is tiled). The (tp, k) -> (k, tp) transpose is
    # small and runs on the otherwise-idle XLU.
    o_ref[...] = jnp.transpose(p).astype(o_ref.dtype)


def _choose_rows_per_tile(num_rows, row_width, itemsize=4, target_tile_bytes=12 << 20):
    """Rows per grid step.  Budget uses the *padded* row width (128-lane f32
    padding), and rows are a multiple of 128 so the (k, tp) output block stays
    lane-dense and the (tp, Fp) x block satisfies the (8, 128) rule."""
    padded_width = ((row_width + 127) // 128) * 128
    rows = target_tile_bytes // (padded_width * itemsize)
    rows = max(128, (rows // 128) * 128)
    if rows >= num_rows:
        return num_rows          # single block == full array extents (always legal)
    return rows
    # TODO(synk): for extremely wide F (padded tile > budget even at 128 rows),
    # add a feature (K) grid axis with an f32 accumulator + pl.when epilogue.


def logistic_regression(x, w, b):
    """x: (B, F) f32, w: (1, F) f32 (torch Linear weight), b: (1,) f32 -> (B, 1) f32."""
    x = jnp.asarray(x, jnp.float32)
    w = jnp.reshape(jnp.asarray(w, jnp.float32), (-1,))     # (F,)
    b = jnp.reshape(jnp.asarray(b, jnp.float32), (1,))
    B, F = x.shape

    # Row packing for small F: k logical rows per 128-lane row (free row-major
    # reshape of the HBM operand).  Falls back to k = 1 for general F.
    if F <= 128 and 128 % F == 0 and B % (128 // F) == 0:
        k = 128 // F
    else:
        k = 1
        # TODO(synk): small F that does not divide 128 (or ragged B) could use a
        # bulk+tail split to keep the bulk lane-dense; fallback is correct but
        # runs at ~F/128 of the HBM roofline for F < 128.
    P, Fp = B // k, k * F
    xp = x.reshape(P, Fp)

    # Block-diagonal, lane-major weight: w2[g, g*F + f] = w[f]; k == 1 -> (1, F).
    w2 = (jnp.eye(k, dtype=jnp.float32)[:, :, None] * w[None, None, :]).reshape(k, Fp)

    tp = _choose_rows_per_tile(P, Fp)
    num_tiles = pl.cdiv(P, tp)      # ragged last block is masked by Pallas (no jnp.pad)

    out = pl.pallas_call(
        _logreg_kernel,
        out_shape=jax.ShapeDtypeStruct((k, P), jnp.float32),
        grid=(num_tiles,),
        in_specs=[
            pl.BlockSpec((tp, Fp), lambda i: (i, 0)),   # x: pipelined, lane-dense tiles
            pl.BlockSpec((k, Fp), lambda i: (0, 0)),    # weight: tiny resident block
            pl.BlockSpec(memory_space=pltpu.SMEM),      # bias: scalar path
        ],
        out_specs=pl.BlockSpec((k, tp), lambda i: (0, i)),   # lane-dense output blocks
        compiler_params=pltpu.CompilerParams(
            dimension_semantics=("parallel",),          # megacore sharding on v7x
            vmem_limit_bytes=48 << 20,                  # ~24 MiB double-buffered x + slack
        ),
    )(xp, w2, b)

    # (k, P) -> (P, k) -> row-major flatten == logical row order -> (B, 1).
    return jnp.transpose(out).reshape(P * k, 1)[:B]


if __name__ == "__main__":
    key = jax.random.PRNGKey(0)
    kx, kw, kb = jax.random.split(key, 3)

    batch, input_features = 8, 32

    x = jax.random.normal(kx, (batch, input_features), dtype=jnp.float32)
    # Deterministic "Linear(input_features, 1)" params (torch layout: W (1, F), b (1,)).
    w = jax.random.normal(kw, (1, input_features), dtype=jnp.float32) * 0.1
    b = jax.random.normal(kb, (1,), dtype=jnp.float32) * 0.1

    fwd = jax.jit(logistic_regression)
    out = jax.block_until_ready(fwd(x, w, b))

    # Reference check (bf16 MXU operands -> small tolerance on the f32 reference).
    ref = jax.nn.sigmoid(x @ w.T + b)
    assert out.shape == (batch, 1)
    assert jnp.allclose(out, ref, atol=5e-3), "mismatch vs reference"

    print("KERNEL_OK")
</pallas_src>

<mosaic_0001>
module attributes {stable_mosaic.version = 11 : i64} {
  func.func @_logreg_kernel(%arg0: i32, %arg1: memref<2x128xf32, #tpu.memory_space<vmem>>, %arg2: memref<4x128xf32, #tpu.memory_space<vmem>>, %arg3: memref<1xf32, #tpu.memory_space<smem>>, %arg4: memref<4x2xf32, #tpu.memory_space<vmem>>) attributes {dimension_semantics = [#tpu.dimension_semantics<parallel>], iteration_bounds = array<i64: 1>, scalar_prefetch = 0 : i64, scratch_operands = 0 : i64, tpu.core_type = #tpu.core_type<tc>, window_params = [{transform_indices = @transform_0, window_bounds = array<i64: 2, 128>}, {pipeline_mode = #tpu.pipeline_mode<synchronous>, transform_indices = @transform_1, window_bounds = array<i64: 4, 128>}, {transform_indices = @transform_2, window_bounds = array<i64: 1>}, {transform_indices = @transform_3, window_bounds = array<i64: 4, 2>}]} {
    %c0 = arith.constant 0 : index
    %c0_0 = arith.constant 0 : index
    %0 = vector.load %arg1[%c0, %c0_0] : memref<2x128xf32, #tpu.memory_space<vmem>>, vector<2x128xf32>
    %1 = arith.truncf %0 : vector<2x128xf32> to vector<2x128xbf16>
    %c0_1 = arith.constant 0 : index
    %c0_2 = arith.constant 0 : index
    %2 = vector.load %arg2[%c0_1, %c0_2] : memref<4x128xf32, #tpu.memory_space<vmem>>, vector<4x128xf32>
    %3 = arith.truncf %2 : vector<4x128xf32> to vector<4x128xbf16>
    %cst = arith.constant dense<0.000000e+00> : vector<2x4xf32>
    %4 = tpu.matmul %1, %3, %cst {dimension_numbers = #tpu.dot_dimension_numbers<[1], [1], [0], [0], [0, 0, 1, 0], [], []>} : vector<2x128xbf16>, vector<4x128xbf16>, vector<2x4xf32> -> vector<2x4xf32>
    %c0_3 = arith.constant 0 : index
    %5 = memref.load %arg3[%c0_3] : memref<1xf32, #tpu.memory_space<smem>>
    %6 = vector.broadcast %5 : f32 to vector<2x4xf32>
    %7 = arith.addf %4, %6 : vector<2x4xf32>
    %cst_4 = arith.constant 0.000000e+00 : f32
    %8 = vector.broadcast %cst_4 : f32 to vector<2x4xf32>
    %9 = arith.subf %8, %7 : vector<2x4xf32>
    %10 = math.exp %9 : vector<2x4xf32>
    %cst_5 = arith.constant 1.000000e+00 : f32
    %11 = vector.broadcast %cst_5 : f32 to vector<2x4xf32>
    %12 = arith.addf %11, %10 : vector<2x4xf32>
    %cst_6 = arith.constant 1.000000e+00 : f32
    %13 = vector.broadcast %cst_6 : f32 to vector<2x4xf32>
    %14 = arith.divf %13, %12 : vector<2x4xf32>
    %15 = tpu.transpose %14, [1, 0] : vector<2x4xf32> -> vector<4x2xf32>
    %c0_7 = arith.constant 0 : index
    %c0_8 = arith.constant 0 : index
    %16 = vector.load %arg4[%c0_7, %c0_8] : memref<4x2xf32, #tpu.memory_space<vmem>>, vector<4x2xf32>
    tpu.vector_store %arg4[%c0_7, %c0_8], %15 {strides = array<i32>} : memref<4x2xf32, #tpu.memory_space<vmem>>, vector<4x2xf32>,
    return
  }
  func.func @transform_0(%arg0: i32) -> (i32, i32) {
    %c0_i32 = arith.constant 0 : i32
    %c0_i32_0 = arith.constant 0 : i32
    return %arg0, %c0_i32 : i32, i32
  }
  func.func @transform_1(%arg0: i32) -> (i32, i32) {
    %c0_i32 = arith.constant 0 : i32
    %c0_i32_0 = arith.constant 0 : i32
    %c0_i32_1 = arith.constant 0 : i32
    return %c0_i32, %c0_i32_0 : i32, i32
  }
  func.func @transform_2(%arg0: i32) -> i32 {
    %c0_i32 = arith.constant 0 : i32
    %c0_i32_0 = arith.constant 0 : i32
    return %c0_i32 : i32
  }
  func.func @transform_3(%arg0: i32) -> (i32, i32) {
    %c0_i32 = arith.constant 0 : i32
    %c0_i32_0 = arith.constant 0 : i32
    return %c0_i32, %arg0 : i32, i32
  }
}

</mosaic_0001>

<bundles_post_ra>
// kernel: logistic_regression.1
= control target key start
LH: loop header
LB: loop body
LE: loop exit
PB: predicated region body
PF: predicated region fallthrough
CT: control target
= control target key end

     0   :  { %v120_v0 = vmov 0.0   ;;  %vm121_vm0 = vmmov 0   ;;  %vm100_vm1 = vcmask 11264   ;;  %s154_s1 = inlined_call_operand.vmem [shape: f32[4,128], index: 1, kind: input, shape index: {}]   ;;  %s155_s0 = inlined_call_operand.vmem [shape: f32[2,128], index: 0, kind: input, shape index: {}]   ;;  %s156_s2 = inlined_call_operand.<no memory space> [shape: f32[1], index: 2, kind: input, shape index: {}]   ;;  %s157_s3 = inlined_call_operand.vmem [shape: f32[4,2], index: 3, kind: output, shape index: {}]  }
   0x1   :  { %108 = vmatprep.subr.bf16.mxu0 %v120_v0  ;;  %v18_v1 = vld [vmem:[%s154_s1] sm:$0xf]  ;;  %110 = vmatprep.mubr.msk.bf16.mxu0 %vm121_vm0, %v120_v0  ;;  %v21_v5 = vstv %s156_s2 }
   0x2   :  { %v19_v2 = vpack.c.bf16 %v18_v1, %v18_v1  ;;  %v16_v3 = vld [vmem:[%s155_s0] sm:$0x3] }
   0x3   :  { %v17_v4 = vpack.c.bf16 %v16_v3, %v16_v3 }
   0x4   :  { %109 = vmatpush3.bf16.xpose.msra.mxu0 %v19_v2 }
   0xb   :  { %111 = vmatmul.mubr.bf16.vlgmr.msra.gmra.mrb[0].mxu0 %v17_v4 }
  0xde   :  { %v56_v6 = vpop.f32.mrb[0].mxu0 }
  0xdf   :  { %v57_v7 = vadd.f32 %v56_v6, %v21_v5  ;;  %v112_v8 = vpop.f32.mrb[1].mxu0 }
  0xe0   :  { %v59_v9 = vpop.f32.mrb[2].mxu0 }
  0xe1   :  { %v62_v10 = vsub.f32 0.0, %v57_v7  ;;  %v113_v11 = vpop.f32.mrb[3].mxu0 }
  0xe3   :  { %v63_v12 = vmul.f32 1.442695, %v62_v10 }
  0xe5   :  { %116 = vpow2.f32 %v63_v12 }
  0xef   :  { %v117_v13 = vpop.eup %116 }
  0xf0   :  { %v65_v14 = vadd.f32 1.0, %v117_v13 }
  0xf2   :  { %118 = vrcp.f32 %v65_v14 }
  0xfc   :  { %v119_v15 = vpop.eup %118 }
  0xfd   :  { %68 = vxpose.xlu0.b32.start.end [1/1] (short) (narrow) %v119_v15, 8 }
 0x17d   :  { %v84_v16 = vpop.trf.xlu0 }
 0x17e   :  { %101 = vst.msk [vmem:[%s157_s3] sm:$0xf] %vm100_vm1, %v84_v16 }

</bundles_post_ra>
